<compile_context>
chip_gen: v6e
topology: v6e:2x2x1
jax: 0.10.0
libtpu: 0.0.40
codegen_flags: <defaults>
</compile_context>

<pallas_src>
import math
from functools import partial

import numpy as np
import jax
import jax.numpy as jnp
from jax.experimental import pallas as pl
from jax.experimental.pallas import tpu as pltpu

_TWO_PI = 2.0 * math.pi


def _mod_2pi(x):
    # floor-mod (matches torch's `%` for the non-negative phases produced here)
    return x - jnp.floor(x * (1.0 / _TWO_PI)) * _TWO_PI


def _sine_gen_kernel(upp, samp_rate, sine_amp, noise_std, voiced_threshold,
                     f0_ref, noise_ref, prev_ref, a_ref, b_ref,
                     sine_ref, uv_ref, noise_out_ref, new_phase_ref):
    """Blocks (D = upp * dim, lane l = j*dim + h  with j = upsample step, h = harmonic):
      f0_ref        (nb, 1, L, 1)   frame-level f0
      noise_ref     (nb, 1, L, D)   standard-normal noise (== torch (nb, T, dim) layout)
      prev_ref      (nb, 1, 1, D)   carried-in phase, already expanded per lane
      a_ref         (1, 1, 1, D)    pattern  upp * (h + 1)
      b_ref         (1, 1, 1, D)    pattern  (j + 1) * (h + 1)
      sine_ref      (nb, 1, L, D)   sine_amp*sin(phase)*uv + noise
      uv_ref        (nb, 1, L, upp) voiced/unvoiced mask (== torch (nb, T, 1) layout)
      noise_out_ref (nb, 1, L, D)   scaled noise
      new_phase_ref (nb, 1, 1, D)   phase to carry to the next call (mod 2*pi)
    """
    nb, _, L, _ = f0_ref.shape

    f0 = f0_ref[...]                                       # (nb, 1, L, 1)
    rad1 = f0 * (_TWO_PI / samp_rate)                      # fundamental rad / upsampled sample

    # Inclusive prefix sum of rad1 over the frame (sublane) axis: log2(L) shifted adds.
    cum = rad1
    s = 1
    while s < L:
        shifted = jnp.concatenate(
            [jnp.zeros((nb, 1, s, 1), cum.dtype), cum[:, :, :L - s, :]], axis=2)
        cum = cum + shifted
        s *= 2
    cum_excl = cum - rad1                                  # exclusive prefix sum

    prev = prev_ref[...]                                   # (nb, 1, 1, D)
    a_pat = a_ref[...]                                     # (1, 1, 1, D) = upp*(h+1)
    b_pat = b_ref[...]                                     # (1, 1, 1, D) = (j+1)*(h+1)

    # phase[b, i, j, h] = prev[b, h] + upp*(h+1)*cum_excl[b, i] + (j+1)*(h+1)*rad1[b, i]
    phase = _mod_2pi(prev + a_pat * cum_excl + b_pat * rad1)       # (nb, 1, L, D)
    sine = jnp.sin(phase) * sine_amp

    uv = (f0 > voiced_threshold).astype(jnp.float32)               # (nb, 1, L, 1)
    noise_amp = uv * noise_std + (1.0 - uv) * (sine_amp / 3.0)
    noise = noise_amp * noise_ref[...]                             # (nb, 1, L, D)

    sine_ref[...] = (sine * uv + noise).astype(sine_ref.dtype)
    uv_ref[...] = jnp.broadcast_to(uv, (nb, 1, L, upp)).astype(uv_ref.dtype)
    noise_out_ref[...] = noise.astype(noise_out_ref.dtype)

    # Carried phase = phase at the final upsampled sample (no j dependence), mod 2*pi.
    new_phase_ref[...] = _mod_2pi(
        prev + a_pat * cum[:, :, L - 1:L, :]).astype(new_phase_ref.dtype)


def sine_gen(f0, noise, upp, *, samp_rate, harmonic_num=0, sine_amp=0.1,
             noise_std=0.003, voiced_threshold=0.0, prev_phase=None,
             batch_block=None):
    """f0: (B, L) frame-level f0.  noise: standard normal, shape (B, T, dim) with
    T = L*upp (the torch layout of randn_like).  Returns
    (sine_waves (B, T, dim), uv (B, T, 1), noise (B, T, dim), new_prev_phase (B, dim))."""
    B, L = f0.shape
    dim = harmonic_num + 1
    T = L * upp
    D = upp * dim

    if prev_phase is None:
        prev_phase = jnp.zeros((B, dim), jnp.float32)
    nb = B if batch_block is None else batch_block
    assert B % nb == 0, "batch_block must divide the batch size"

    # Kernel-native layouts: pure (free) reshapes / a tiny tile -- no HBM transposes.
    f0_in = f0.astype(jnp.float32).reshape(B, 1, L, 1)
    noise_in = noise.astype(jnp.float32).reshape(B, 1, L, D)
    prev_in = jnp.tile(prev_phase.astype(jnp.float32), (1, upp)).reshape(B, 1, 1, D)

    # Per-lane phase-combination patterns (lane l = j*dim + h).
    h_idx = np.tile(np.arange(dim), upp)
    j_idx = np.repeat(np.arange(upp), dim)
    a_lane = jnp.asarray((upp * (h_idx + 1)).astype(np.float32)).reshape(1, 1, 1, D)
    b_lane = jnp.asarray(((j_idx + 1) * (h_idx + 1)).astype(np.float32)).reshape(1, 1, 1, D)

    kernel = partial(_sine_gen_kernel, upp, float(samp_rate), float(sine_amp),
                     float(noise_std), float(voiced_threshold))

    out_shape = (
        jax.ShapeDtypeStruct((B, 1, L, D), jnp.float32),     # sine_waves
        jax.ShapeDtypeStruct((B, 1, L, upp), jnp.float32),   # uv
        jax.ShapeDtypeStruct((B, 1, L, D), jnp.float32),     # noise
        jax.ShapeDtypeStruct((B, 1, 1, D), jnp.float32),     # carried phase (lane-expanded)
    )
    in_specs = [
        pl.BlockSpec((nb, 1, L, 1), lambda b: (b, 0, 0, 0)),
        pl.BlockSpec((nb, 1, L, D), lambda b: (b, 0, 0, 0)),
        pl.BlockSpec((nb, 1, 1, D), lambda b: (b, 0, 0, 0)),
        pl.BlockSpec((1, 1, 1, D), lambda b: (0, 0, 0, 0)),
        pl.BlockSpec((1, 1, 1, D), lambda b: (0, 0, 0, 0)),
    ]
    out_specs = (
        pl.BlockSpec((nb, 1, L, D), lambda b: (b, 0, 0, 0)),
        pl.BlockSpec((nb, 1, L, upp), lambda b: (b, 0, 0, 0)),
        pl.BlockSpec((nb, 1, L, D), lambda b: (b, 0, 0, 0)),
        pl.BlockSpec((nb, 1, 1, D), lambda b: (b, 0, 0, 0)),
    )

    sine4, uv4, noise4, newp = pl.pallas_call(
        kernel,
        out_shape=out_shape,
        grid=(B // nb,),
        in_specs=in_specs,
        out_specs=out_specs,
        compiler_params=pltpu.CompilerParams(dimension_semantics=("parallel",)),
    )(f0_in, noise_in, prev_in, a_lane, b_lane)

    # (B, 1, L, D) is already the contiguous (B, T, dim) layout -- reshapes only.
    sine = sine4.reshape(B, T, dim)
    uv = uv4.reshape(B, T, 1)
    noise_out = noise4.reshape(B, T, dim)
    new_prev = newp.reshape(B, upp, dim)[:, 0, :]            # all upsample slots identical
    return sine, uv, noise_out, new_prev


def sine_gen_reference(f0, noise_btd, upp, *, samp_rate, harmonic_num, sine_amp,
                       noise_std, voiced_threshold, prev_phase=None):
    """Pure-JAX reference mirroring the torch module (nearest upsample + full cumsum)."""
    B, L = f0.shape
    dim = harmonic_num + 1
    if prev_phase is None:
        prev_phase = jnp.zeros((B, dim), jnp.float32)
    mult = jnp.arange(1, dim + 1, dtype=jnp.float32)
    rad = (f0[:, :, None] * mult[None, None, :]) / samp_rate * (2.0 * jnp.pi)  # (B, L, dim)
    rad_up = jnp.repeat(rad, upp, axis=1)                                      # (B, T, dim)
    phase = jnp.cumsum(rad_up, axis=1) + prev_phase[:, None, :]
    phase = jnp.mod(phase, 2.0 * jnp.pi)
    sine = jnp.sin(phase) * sine_amp
    uv = (f0 > voiced_threshold).astype(jnp.float32)[:, :, None]               # (B, L, 1)
    uv_up = jnp.repeat(uv, upp, axis=1)                                        # (B, T, 1)
    noise_amp = uv_up * noise_std + (1.0 - uv_up) * (sine_amp / 3.0)
    noise = noise_amp * noise_btd
    return sine * uv_up + noise, uv_up, noise, phase[:, -1, :]


if __name__ == "__main__":
    samp_rate = 16000.0
    harmonic_num = 3               # dim = 4 sine channels (f0, 2*f0, 3*f0, 4*f0)
    upp = 16                       # upsampling factor
    sine_amp, noise_std, voiced_threshold = 0.1, 0.003, 0.0
    B, L = 2, 8                    # batch, number of f0 frames
    dim = harmonic_num + 1
    T = L * upp

    key = jax.random.PRNGKey(0)
    k_f0, k_voiced, k_noise = jax.random.split(key, 3)
    f0 = jax.random.uniform(k_f0, (B, L), jnp.float32, 80.0, 400.0)
    voiced = (jax.random.uniform(k_voiced, (B, L), jnp.float32) > 0.25).astype(jnp.float32)
    f0 = f0 * voiced                                           # include unvoiced (f0 = 0) frames
    noise = jax.random.normal(k_noise, (B, T, dim), jnp.float32)   # i.i.d. N(0,1) ~ randn_like

    sine, uv, noise_out, new_prev = sine_gen(
        f0, noise, upp, samp_rate=samp_rate, harmonic_num=harmonic_num,
        sine_amp=sine_amp, noise_std=noise_std, voiced_threshold=voiced_threshold)
    sine, uv, noise_out, new_prev = jax.block_until_ready((sine, uv, noise_out, new_prev))

    ref_sine, ref_uv, ref_noise, ref_prev = sine_gen_reference(
        f0, noise, upp, samp_rate=samp_rate, harmonic_num=harmonic_num,
        sine_amp=sine_amp, noise_std=noise_std, voiced_threshold=voiced_threshold)

    np.testing.assert_allclose(np.asarray(sine), np.asarray(ref_sine), rtol=1e-3, atol=1e-4)
    np.testing.assert_allclose(np.asarray(uv), np.asarray(ref_uv), rtol=0.0, atol=1e-6)
    np.testing.assert_allclose(np.asarray(noise_out), np.asarray(ref_noise), rtol=1e-5, atol=1e-6)
    # Carried phase is compared on the unit circle (tolerant to 2*pi wrap at boundaries).
    np.testing.assert_allclose(np.sin(np.asarray(new_prev)), np.sin(np.asarray(ref_prev)), atol=1e-4)
    np.testing.assert_allclose(np.cos(np.asarray(new_prev)), np.cos(np.asarray(ref_prev)), atol=1e-4)

    print("KERNEL_OK")
</pallas_src>

<mosaic_0001>
module attributes {stable_mosaic.version = 11 : i64} {
  func.func @_sine_gen_kernel(%arg0: i32, %arg1: memref<2x1x8x1xf32, #tpu.memory_space<vmem>>, %arg2: memref<2x1x8x64xf32, #tpu.memory_space<vmem>>, %arg3: memref<2x1x1x64xf32, #tpu.memory_space<vmem>>, %arg4: memref<1x1x1x64xf32, #tpu.memory_space<vmem>>, %arg5: memref<1x1x1x64xf32, #tpu.memory_space<vmem>>, %arg6: memref<2x1x8x64xf32, #tpu.memory_space<vmem>>, %arg7: memref<2x1x8x16xf32, #tpu.memory_space<vmem>>, %arg8: memref<2x1x8x64xf32, #tpu.memory_space<vmem>>, %arg9: memref<2x1x1x64xf32, #tpu.memory_space<vmem>>) attributes {dimension_semantics = [#tpu.dimension_semantics<parallel>], iteration_bounds = array<i64: 1>, scalar_prefetch = 0 : i64, scratch_operands = 0 : i64, tpu.core_type = #tpu.core_type<tc>, window_params = [{transform_indices = @transform_0, window_bounds = array<i64: 2, 1, 8, 1>}, {transform_indices = @transform_1, window_bounds = array<i64: 2, 1, 8, 64>}, {transform_indices = @transform_2, window_bounds = array<i64: 2, 1, 1, 64>}, {pipeline_mode = #tpu.pipeline_mode<synchronous>, transform_indices = @transform_3, window_bounds = array<i64: 1, 1, 1, 64>}, {pipeline_mode = #tpu.pipeline_mode<synchronous>, transform_indices = @transform_4, window_bounds = array<i64: 1, 1, 1, 64>}, {transform_indices = @transform_5, window_bounds = array<i64: 2, 1, 8, 64>}, {transform_indices = @transform_6, window_bounds = array<i64: 2, 1, 8, 16>}, {transform_indices = @transform_7, window_bounds = array<i64: 2, 1, 8, 64>}, {transform_indices = @transform_8, window_bounds = array<i64: 2, 1, 1, 64>}]} {
    %c0 = arith.constant 0 : index
    %c0_0 = arith.constant 0 : index
    %c0_1 = arith.constant 0 : index
    %c0_2 = arith.constant 0 : index
    %0 = vector.load %arg1[%c0, %c0_0, %c0_1, %c0_2] : memref<2x1x8x1xf32, #tpu.memory_space<vmem>>, vector<2x1x8x1xf32>
    %cst = arith.constant 3.9269909E-4 : f32
    %1 = vector.broadcast %cst : f32 to vector<2x1x8x1xf32>
    %2 = arith.mulf %0, %1 : vector<2x1x8x1xf32>
    %cst_3 = arith.constant 0.000000e+00 : f32
    %3 = vector.broadcast %cst_3 : f32 to vector<2x1x1x1xf32>
    %4 = vector.extract_strided_slice %2 {offsets = [0, 0, 0, 0], sizes = [2, 1, 7, 1], strides = [1, 1, 1, 1]} : vector<2x1x8x1xf32> to vector<2x1x7x1xf32>
    %5 = tpu.concatenate %3, %4 in 2 : vector<2x1x1x1xf32>, vector<2x1x7x1xf32> -> vector<2x1x8x1xf32>
    %6 = arith.addf %2, %5 : vector<2x1x8x1xf32>
    %cst_4 = arith.constant 0.000000e+00 : f32
    %7 = vector.broadcast %cst_4 : f32 to vector<2x1x2x1xf32>
    %8 = vector.extract_strided_slice %6 {offsets = [0, 0, 0, 0], sizes = [2, 1, 6, 1], strides = [1, 1, 1, 1]} : vector<2x1x8x1xf32> to vector<2x1x6x1xf32>
    %9 = tpu.concatenate %7, %8 in 2 : vector<2x1x2x1xf32>, vector<2x1x6x1xf32> -> vector<2x1x8x1xf32>
    %10 = arith.addf %6, %9 : vector<2x1x8x1xf32>
    %cst_5 = arith.constant 0.000000e+00 : f32
    %11 = vector.broadcast %cst_5 : f32 to vector<2x1x4x1xf32>
    %12 = vector.extract_strided_slice %10 {offsets = [0, 0, 0, 0], sizes = [2, 1, 4, 1], strides = [1, 1, 1, 1]} : vector<2x1x8x1xf32> to vector<2x1x4x1xf32>
    %13 = tpu.concatenate %11, %12 in 2 : vector<2x1x4x1xf32>, vector<2x1x4x1xf32> -> vector<2x1x8x1xf32>
    %14 = arith.addf %10, %13 : vector<2x1x8x1xf32>
    %15 = arith.subf %14, %2 : vector<2x1x8x1xf32>
    %c0_6 = arith.constant 0 : index
    %c0_7 = arith.constant 0 : index
    %c0_8 = arith.constant 0 : index
    %c0_9 = arith.constant 0 : index
    %16 = vector.load %arg3[%c0_6, %c0_7, %c0_8, %c0_9] : memref<2x1x1x64xf32, #tpu.memory_space<vmem>>, vector<2x1x1x64xf32>
    %c0_10 = arith.constant 0 : index
    %c0_11 = arith.constant 0 : index
    %c0_12 = arith.constant 0 : index
    %c0_13 = arith.constant 0 : index
    %17 = vector.load %arg4[%c0_10, %c0_11, %c0_12, %c0_13] : memref<1x1x1x64xf32, #tpu.memory_space<vmem>>, vector<1x1x1x64xf32>
    %c0_14 = arith.constant 0 : index
    %c0_15 = arith.constant 0 : index
    %c0_16 = arith.constant 0 : index
    %c0_17 = arith.constant 0 : index
    %18 = vector.load %arg5[%c0_14, %c0_15, %c0_16, %c0_17] : memref<1x1x1x64xf32, #tpu.memory_space<vmem>>, vector<1x1x1x64xf32>
    %19 = vector.broadcast %17 : vector<1x1x1x64xf32> to vector<2x1x8x64xf32>
    %20 = vector.broadcast %15 : vector<2x1x8x1xf32> to vector<2x1x8x64xf32>
    %21 = arith.mulf %19, %20 : vector<2x1x8x64xf32>
    %22 = vector.broadcast %16 : vector<2x1x1x64xf32> to vector<2x1x8x64xf32>
    %23 = arith.addf %22, %21 : vector<2x1x8x64xf32>
    %24 = vector.broadcast %18 : vector<1x1x1x64xf32> to vector<2x1x8x64xf32>
    %25 = vector.broadcast %2 : vector<2x1x8x1xf32> to vector<2x1x8x64xf32>
    %26 = arith.mulf %24, %25 : vector<2x1x8x64xf32>
    %27 = arith.addf %23, %26 : vector<2x1x8x64xf32>
    %cst_18 = arith.constant 0.159154937 : f32
    %28 = vector.broadcast %cst_18 : f32 to vector<2x1x8x64xf32>
    %29 = arith.mulf %27, %28 : vector<2x1x8x64xf32>
    %30 = math.floor %29 : vector<2x1x8x64xf32>
    %cst_19 = arith.constant 6.28318548 : f32
    %31 = vector.broadcast %cst_19 : f32 to vector<2x1x8x64xf32>
    %32 = arith.mulf %30, %31 : vector<2x1x8x64xf32>
    %33 = arith.subf %27, %32 : vector<2x1x8x64xf32>
    %34 = math.sin %33 : vector<2x1x8x64xf32>
    %cst_20 = arith.constant 1.000000e-01 : f32
    %35 = vector.broadcast %cst_20 : f32 to vector<2x1x8x64xf32>
    %36 = arith.mulf %34, %35 : vector<2x1x8x64xf32>
    %cst_21 = arith.constant 0.000000e+00 : f32
    %37 = vector.broadcast %cst_21 : f32 to vector<2x1x8x1xf32>
    %38 = arith.cmpf ogt, %0, %37 : vector<2x1x8x1xf32>
    %39 = arith.extui %38 : vector<2x1x8x1xi1> to vector<2x1x8x1xi32>
    %40 = arith.sitofp %39 : vector<2x1x8x1xi32> to vector<2x1x8x1xf32>
    %cst_22 = arith.constant 3.000000e-03 : f32
    %41 = vector.broadcast %cst_22 : f32 to vector<2x1x8x1xf32>
    %42 = arith.mulf %40, %41 : vector<2x1x8x1xf32>
    %cst_23 = arith.constant 1.000000e+00 : f32
    %43 = vector.broadcast %cst_23 : f32 to vector<2x1x8x1xf32>
    %44 = arith.subf %43, %40 : vector<2x1x8x1xf32>
    %cst_24 = arith.constant 0.0333333351 : f32
    %45 = vector.broadcast %cst_24 : f32 to vector<2x1x8x1xf32>
    %46 = arith.mulf %44, %45 : vector<2x1x8x1xf32>
    %47 = arith.addf %42, %46 : vector<2x1x8x1xf32>
    %c0_25 = arith.constant 0 : index
    %c0_26 = arith.constant 0 : index
    %c0_27 = arith.constant 0 : index
    %c0_28 = arith.constant 0 : index
    %48 = vector.load %arg2[%c0_25, %c0_26, %c0_27, %c0_28] : memref<2x1x8x64xf32, #tpu.memory_space<vmem>>, vector<2x1x8x64xf32>
    %49 = vector.broadcast %47 : vector<2x1x8x1xf32> to vector<2x1x8x64xf32>
    %50 = arith.mulf %49, %48 : vector<2x1x8x64xf32>
    %51 = vector.broadcast %40 : vector<2x1x8x1xf32> to vector<2x1x8x64xf32>
    %52 = arith.mulf %36, %51 : vector<2x1x8x64xf32>
    %53 = arith.addf %52, %50 : vector<2x1x8x64xf32>
    %c0_29 = arith.constant 0 : index
    %c0_30 = arith.constant 0 : index
    %c0_31 = arith.constant 0 : index
    %c0_32 = arith.constant 0 : index
    %54 = vector.load %arg6[%c0_29, %c0_30, %c0_31, %c0_32] : memref<2x1x8x64xf32, #tpu.memory_space<vmem>>, vector<2x1x8x64xf32>
    tpu.vector_store %arg6[%c0_29, %c0_30, %c0_31, %c0_32], %53 {strides = array<i32>} : memref<2x1x8x64xf32, #tpu.memory_space<vmem>>, vector<2x1x8x64xf32>,
    %55 = vector.shape_cast %40 : vector<2x1x8x1xf32> to vector<2x1x8x1xf32>
    %56 = vector.broadcast %55 : vector<2x1x8x1xf32> to vector<2x1x8x16xf32>
    %c0_33 = arith.constant 0 : index
    %c0_34 = arith.constant 0 : index
    %c0_35 = arith.constant 0 : index
    %c0_36 = arith.constant 0 : index
    %57 = vector.load %arg7[%c0_33, %c0_34, %c0_35, %c0_36] : memref<2x1x8x16xf32, #tpu.memory_space<vmem>>, vector<2x1x8x16xf32>
    tpu.vector_store %arg7[%c0_33, %c0_34, %c0_35, %c0_36], %56 {strides = array<i32>} : memref<2x1x8x16xf32, #tpu.memory_space<vmem>>, vector<2x1x8x16xf32>,
    %c0_37 = arith.constant 0 : index
    %c0_38 = arith.constant 0 : index
    %c0_39 = arith.constant 0 : index
    %c0_40 = arith.constant 0 : index
    %58 = vector.load %arg8[%c0_37, %c0_38, %c0_39, %c0_40] : memref<2x1x8x64xf32, #tpu.memory_space<vmem>>, vector<2x1x8x64xf32>
    tpu.vector_store %arg8[%c0_37, %c0_38, %c0_39, %c0_40], %50 {strides = array<i32>} : memref<2x1x8x64xf32, #tpu.memory_space<vmem>>, vector<2x1x8x64xf32>,
    %59 = vector.extract_strided_slice %14 {offsets = [0, 0, 7, 0], sizes = [2, 1, 1, 1], strides = [1, 1, 1, 1]} : vector<2x1x8x1xf32> to vector<2x1x1x1xf32>
    %60 = vector.broadcast %17 : vector<1x1x1x64xf32> to vector<2x1x1x64xf32>
    %61 = vector.broadcast %59 : vector<2x1x1x1xf32> to vector<2x1x1x64xf32>
    %62 = arith.mulf %60, %61 : vector<2x1x1x64xf32>
    %63 = arith.addf %16, %62 : vector<2x1x1x64xf32>
    %cst_41 = arith.constant 0.159154937 : f32
    %64 = vector.broadcast %cst_41 : f32 to vector<2x1x1x64xf32>
    %65 = arith.mulf %63, %64 : vector<2x1x1x64xf32>
    %66 = math.floor %65 : vector<2x1x1x64xf32>
    %cst_42 = arith.constant 6.28318548 : f32
    %67 = vector.broadcast %cst_42 : f32 to vector<2x1x1x64xf32>
    %68 = arith.mulf %66, %67 : vector<2x1x1x64xf32>
    %69 = arith.subf %63, %68 : vector<2x1x1x64xf32>
    %c0_43 = arith.constant 0 : index
    %c0_44 = arith.constant 0 : index
    %c0_45 = arith.constant 0 : index
    %c0_46 = arith.constant 0 : index
    %70 = vector.load %arg9[%c0_43, %c0_44, %c0_45, %c0_46] : memref<2x1x1x64xf32, #tpu.memory_space<vmem>>, vector<2x1x1x64xf32>
    tpu.vector_store %arg9[%c0_43, %c0_44, %c0_45, %c0_46], %69 {strides = array<i32>} : memref<2x1x1x64xf32, #tpu.memory_space<vmem>>, vector<2x1x1x64xf32>,
    return
  }
  func.func @transform_0(%arg0: i32) -> (i32, i32, i32, i32) {
    %c0_i32 = arith.constant 0 : i32
    %c0_i32_0 = arith.constant 0 : i32
    %c0_i32_1 = arith.constant 0 : i32
    %c0_i32_2 = arith.constant 0 : i32
    return %arg0, %c0_i32, %c0_i32_0, %c0_i32_1 : i32, i32, i32, i32
  }
  func.func @transform_1(%arg0: i32) -> (i32, i32, i32, i32) {
    %c0_i32 = arith.constant 0 : i32
    %c0_i32_0 = arith.constant 0 : i32
    %c0_i32_1 = arith.constant 0 : i32
    %c0_i32_2 = arith.constant 0 : i32
    return %arg0, %c0_i32, %c0_i32_0, %c0_i32_1 : i32, i32, i32, i32
  }
  func.func @transform_2(%arg0: i32) -> (i32, i32, i32, i32) {
    %c0_i32 = arith.constant 0 : i32
    %c0_i32_0 = arith.constant 0 : i32
    %c0_i32_1 = arith.constant 0 : i32
    %c0_i32_2 = arith.constant 0 : i32
    return %arg0, %c0_i32, %c0_i32_0, %c0_i32_1 : i32, i32, i32, i32
  }
  func.func @transform_3(%arg0: i32) -> (i32, i32, i32, i32) {
    %c0_i32 = arith.constant 0 : i32
    %c0_i32_0 = arith.constant 0 : i32
    %c0_i32_1 = arith.constant 0 : i32
    %c0_i32_2 = arith.constant 0 : i32
    %c0_i32_3 = arith.constant 0 : i32
    return %c0_i32, %c0_i32_0, %c0_i32_1, %c0_i32_2 : i32, i32, i32, i32
  }
  func.func @transform_4(%arg0: i32) -> (i32, i32, i32, i32) {
    %c0_i32 = arith.constant 0 : i32
    %c0_i32_0 = arith.constant 0 : i32
    %c0_i32_1 = arith.constant 0 : i32
    %c0_i32_2 = arith.constant 0 : i32
    %c0_i32_3 = arith.constant 0 : i32
    return %c0_i32, %c0_i32_0, %c0_i32_1, %c0_i32_2 : i32, i32, i32, i32
  }
  func.func @transform_5(%arg0: i32) -> (i32, i32, i32, i32) {
    %c0_i32 = arith.constant 0 : i32
    %c0_i32_0 = arith.constant 0 : i32
    %c0_i32_1 = arith.constant 0 : i32
    %c0_i32_2 = arith.constant 0 : i32
    return %arg0, %c0_i32, %c0_i32_0, %c0_i32_1 : i32, i32, i32, i32
  }
  func.func @transform_6(%arg0: i32) -> (i32, i32, i32, i32) {
    %c0_i32 = arith.constant 0 : i32
    %c0_i32_0 = arith.constant 0 : i32
    %c0_i32_1 = arith.constant 0 : i32
    %c0_i32_2 = arith.constant 0 : i32
    return %arg0, %c0_i32, %c0_i32_0, %c0_i32_1 : i32, i32, i32, i32
  }
  func.func @transform_7(%arg0: i32) -> (i32, i32, i32, i32) {
    %c0_i32 = arith.constant 0 : i32
    %c0_i32_0 = arith.constant 0 : i32
    %c0_i32_1 = arith.constant 0 : i32
    %c0_i32_2 = arith.constant 0 : i32
    return %arg0, %c0_i32, %c0_i32_0, %c0_i32_1 : i32, i32, i32, i32
  }
  func.func @transform_8(%arg0: i32) -> (i32, i32, i32, i32) {
    %c0_i32 = arith.constant 0 : i32
    %c0_i32_0 = arith.constant 0 : i32
    %c0_i32_1 = arith.constant 0 : i32
    %c0_i32_2 = arith.constant 0 : i32
    return %arg0, %c0_i32, %c0_i32_0, %c0_i32_1 : i32, i32, i32, i32
  }
}

</mosaic_0001>

<bundles_post_ra>
// kernel: tpu_custom_call.1
= control target key start
LH: loop header
LB: loop body
LE: loop exit
PB: predicated region body
PF: predicated region fallthrough
CT: control target
= control target key end

     0   :  { %14 = vsyncpa [#allocation3], 0  ;;  %s839_s0 = inlined_call_operand.vmem [shape: f32[2,1,8,1], index: 0, kind: input, shape index: {}]   ;;  %s840_s1 = inlined_call_operand.vmem [shape: f32[2,1,8,64], index: 1, kind: input, shape index: {}]   ;;  %s841_s2 = inlined_call_operand.vmem [shape: f32[2,1,1,64], index: 2, kind: input, shape index: {}]   ;;  %s842_s3 = inlined_call_operand.vmem [shape: f32[1,1,1,64], index: 3, kind: input, shape index: {}]   ;;  %s843_s4 = inlined_call_operand.vmem [shape: f32[1,1,1,64], index: 4, kind: input, shape index: {}]   ;;  %s844_s5 = inlined_call_operand.hbm [shape: f32[2,1,8,64], index: 5, kind: output, shape index: {0}]   ;;  %s845_s6 = inlined_call_operand.hbm [shape: f32[2,1,8,16], index: 6, kind: output, shape index: {1}]   ;;  %s846_s7 = inlined_call_operand.hbm [shape: f32[2,1,8,64], index: 7, kind: output, shape index: {2}]   ;;  %s847_s8 = inlined_call_operand.hbm [shape: f32[2,1,1,64], index: 8, kind: output, shape index: {3}]  }
   0x1   :  { %15 = vsyncpa [#allocation5], 0  ;;  %v27_v0 = vld [vmem:[%s839_s0] sm:$0xff]  ;;  %v28_v1 = vld [vmem:[%s839_s0 + $0x8] sm:$0xff]  ;;  %v620_v2 = vmov 0   ;;  %vm37_vm0 = vcmask 1040384  }
   0x2   :  { %520 = vset.pattern.permute.xlu1 %v620_v2  ;;  %v29_v3 = vmul.f32 0.0003926991, %v27_v0  ;;  %v30_v4 = vmul.f32 0.0003926991, %v28_v1  ;;  %519 = vset.pattern.permute.xlu0 %v620_v2 }
   0x3   :  { %16 = vsyncpa [#allocation8], 0  ;;  %vm339_vm1 = vcmp.gt.f32.partialorder %v28_v1, 0.0  ;;  %vm48_vm2 = vcmask 1041408   ;;  %v621_v11 = vmov 0.0   ;;  %vm59_vm3 = vcmask 1043456  }
   0x4   :  { %109 = vperm.xlu1 %520, %v29_v3   ;;  %v34_v5 = vrot.slane %v30_v4, 7  ;;  %v33_v6 = vrot.slane %v29_v3, 7  ;;  %v494_v12 = vsel %vm339_vm1, 1.0, %v621_v11  ;;  %vm338_vm4 = vcmp.gt.f32.partialorder %v27_v0, 0.0  ;;  %v68_v42 = vld [vmem:[%s842_s3] sm:$0x1] }
   0x5   :  { %v347_v17 = vsub.f32 1.0, %v494_v12  ;;  %v345_v22 = vmul.f32 0.003, %v494_v12  ;;  %v493_v28 = vsel %vm338_vm4, 1.0, %v621_v11  ;;  %v71_v37 = vlaneseq  ;;  %v66_v44 = vld [vmem:[%s841_s2] sm:$0x1] }
   0x6   :  { %v39_v7 = vsel %vm37_vm0, 0.0, %v34_v5  ;;  %v38_v8 = vsel %vm37_vm0, 0.0, %v33_v6  ;;  %v346_v32 = vsub.f32 1.0, %v493_v28  ;;  %v344_v33 = vmul.f32 0.003, %v493_v28  ;;  %v353_v52 = vld [vmem:[%s840_s1 + $0x8] sm:$0xff] }
   0x7   :  { %v41_v9 = vadd.f32 %v39_v7, %v30_v4  ;;  %v40_v10 = vadd.f32 %v38_v8, %v29_v3  ;;  %v349_v23 = vmul.f32 0.033333335, %v347_v17  ;;  %v521_v36 = vpack.i.bf16 %v494_v12, %v493_v28  ;;  %v484_v46 = vld [vmem:[%s843_s4] ss:$0 sm:$0xff]  ;;  %v67_v50 = vld [vmem:[%s841_s2 + $0x1] sm:$0x1] }
   0x8   :  { %113 = vperm.xlu1 %520, %v30_v4   ;;  %v348_v34 = vmul.f32 0.033333335, %v346_v32  ;;  %v72_v39 = vshrl.u32 %v71_v37, 7  ;;  %vm380_vm5 = vcmask 523264   ;;  %vm418_vm6 = vcmask 516096   ;;  %s623_s18 = smov [#allocation6]  }
   0x9   :  { %v45_v13 = vrot.slane %v41_v9, 6  ;;  %v44_v14 = vrot.slane %v40_v10, 6  ;;  %v351_v30 = vadd.f32 %v349_v23, %v345_v22  ;;  %vm383_vm7 = vcmask 130048   ;;  %s450_s19 = sshll.u32 %s623_s18, 4  ;;  %s624_s20 = smov [#allocation7]   ;;  %s451_s19 = int_to_ptr.vmem [resolvable:$true] %s450_s19 }
   0xa   :  { %v350_v35 = vadd.f32 %v348_v34, %v344_v33  ;;  %v73_v41 = vsub.s32 0, %v72_v39  ;;  %v398_v43 = vsub.s32 7, %v72_v39  ;;  %s462_s21 = sshll.u32 %s624_s20, 4  ;;  %s731_s21 = int_to_ptr.vmem [resolvable:$true] %s462_s21 }
   0xb   :  { %v50_v15 = vsel %vm48_vm2, 0.0, %v45_v13  ;;  %v49_v16 = vsel %vm48_vm2, 0.0, %v44_v14 }
   0xc   :  { %v52_v18 = vadd.f32 %v50_v15, %v41_v9  ;;  %v51_v19 = vadd.f32 %v49_v16, %v40_v10  ;;  %v74_v45 = vrot.slane %v68_v42, %v73_v41  ;;  %v93_v49 = vrot.slane %v66_v44, %v73_v41  ;;  %v352_v10 = vld [vmem:[%s840_s1] sm:$0xff]  ;;  %s622_s1 = smov [#allocation4]  }
   0xd   :  { %v97_v60 = vrot.slane %v67_v50, %v73_v41  ;;  %s438_s17 = sshll.u32 %s622_s1, 4  ;;  %s439_s17 = int_to_ptr.vmem [resolvable:$true] %s438_s17 }
   0xe   :  { %v56_v20 = vrot.slane %v52_v18, 4  ;;  %v55_v21 = vrot.slane %v51_v19, 4  ;;  %s534_s22 = scalar_lea.vmem %s439_s17, 256  ;;  %p539_p1 = scmp.lt.s32.totalorder %s439_s17, %s439_s17 }
   0xf   :  { %p535_p0 = scmp.ne.s32.totalorder %s439_s17, %s534_s22  ;;  %p540_p2 = scmp.lt.s32.totalorder %s534_s22, %s534_s22 }
  0x10   :  { %v61_v24 = vsel %vm59_vm3, 0.0, %v56_v20  ;;  %v60_v25 = vsel %vm59_vm3, 0.0, %v55_v21 }
  0x11   :  { %v63_v26 = vadd.f32 %v61_v24, %v52_v18  ;;  %v62_v27 = vadd.f32 %v60_v25, %v51_v19  ;;  %p541_p3 = por %p540_p2, %p539_p1 }
  0x13   :  { %394 = vperm.xlu1 %520, %v63_v26   ;;  %v64_v29 = vsub.f32 %v62_v27, %v29_v3  ;;  %v65_v31 = vsub.f32 %v63_v26, %v30_v4  ;;  %p542_p4 = pnand %p541_p3, %p535_p0 }
  0x15   :  { %78 = vperm.xlu0 %519, %v64_v29  }
  0x17   :  { %361 = vperm.xlu1 %520, %v351_v30  }
  0x19   :  { %83 = vperm.xlu0 %519, %v65_v31  }
  0x1d   :  { %390 = vperm.xlu0 %519, %v62_v27  }
  0x21   :  { %356 = vperm.xlu0 %519, %v350_v35  }
  0x25   :  { %522 = vperm.xlu0 %519, %v521_v36  }
  0x7f   :  { %v110_v38 = vpop.permute.xlu1 %109 }
  0x80   :  { %v116_v53 = vmul.f32 %v484_v46, %v110_v38 }
  0x83   :  { %v114_v40 = vpop.permute.xlu1 %113 }
  0x84   :  { %v117_v1 = vmul.f32 %v484_v46, %v114_v40 }
  0x8e   :  { %v395_v47 = vpop.permute.xlu1 %394 }
  0x8f   :  { %v403_v48 = vrot.slane %v395_v47, %v398_v43 }
  0x90   :  { %v79_v51 = vpop.permute.xlu0 %78 }
  0x91   :  { %v407_v54 = vmul.f32 %v403_v48, %v68_v42  ;;  %v86_v55 = vmul.f32 %v79_v51, %v74_v45 }
  0x92   :  { %v362_v56 = vpop.permute.xlu1 %361 }
  0x93   :  { %v409_v57 = vadd.f32 %v407_v54, %v67_v50  ;;  %v100_v58 = vadd.f32 %v93_v49, %v86_v55  ;;  %v702_v59 = vmul.f32 %v362_v56, %v353_v52 }
  0x94   :  { %v84_v61 = vpop.permute.xlu0 %83 }
  0x95   :  { %v411_v62 = vmul.f32 0.15915494, %v409_v57  ;;  %v118_v63 = vadd.f32 %v116_v53, %v100_v58  ;;  %387 = vst.msk [vmem:[#allocation6 + $0x8] sm:$0xff] %vm380_vm5, %v702_v59  ;;  %v87_v0 = vmul.f32 %v84_v61, %v74_v45 }
  0x97   :  { %v413_v2 = vfloor.f32 %v411_v62  ;;  %v120_v3 = vmul.f32 0.15915494, %v118_v63  ;;  %v101_v4 = vadd.f32 %v97_v60, %v87_v0 }
  0x98   :  { %v391_v5 = vpop.permute.xlu0 %390 }
  0x99   :  { %v415_v6 = vmul.f32 6.2831855, %v413_v2  ;;  %v122_v7 = vfloor.f32 %v120_v3  ;;  %v119_v8 = vadd.f32 %v117_v1, %v101_v4  ;;  %v399_v9 = vrot.slane %v391_v5, %v398_v43 }
  0x9b   :  { %v417_v11 = vsub.f32 %v409_v57, %v415_v6  ;;  %v124_v12 = vmul.f32 6.2831855, %v122_v7  ;;  %v121_v13 = vmul.f32 0.15915494, %v119_v8  ;;  %v406_v14 = vmul.f32 %v399_v9, %v68_v42 }
  0x9c   :  { %v357_v15 = vpop.permute.xlu0 %356 }
  0x9d   :  { %v709_v16 = vsub.f32 %v118_v63, %v124_v12  ;;  %v123_v17 = vfloor.f32 %v121_v13  ;;  %v408_v18 = vadd.f32 %v406_v14, %v66_v44  ;;  %v711_v19 = vmul.f32 %v357_v15, %v352_v10  ;;  %420 = vst.msk [vmem:[#allocation7 + $0x1] sm:$0x1] %vm418_vm6, %v417_v11 }
  0x9f   :  { %v131_v20 = vand.u32 2139095040, %v709_v16  ;;  %v125_v21 = vmul.f32 6.2831855, %v123_v17  ;;  %v410_v22 = vmul.f32 0.15915494, %v408_v18  ;;  %386 = vst.msk [vmem:[#allocation6] sm:$0xff] %vm380_vm5, %v711_v19 }
  0xa0   :  { %v128_v23 = vand.u32 2147483647, %v709_v16  ;;  %v718_v24 = vpop.permute.xlu0 %522 }
  0xa1   :  { %v132_v25 = vshrl.u32 %v131_v20, 23  ;;  %v720_v26 = vsub.f32 %v119_v8, %v125_v21  ;;  %v412_v27 = vfloor.f32 %v410_v22  ;;  %v525_v28 = vunpack.i.h.bf16 %v718_v24 }
  0xa2   :  { %v135_v29 = vand.u32 8388607, %v128_v23  ;;  %v524_v30 = vunpack.i.l.bf16 %v718_v24 }
  0xa3   :  { %v485_v31 = vadd.s32 4294967169, %v132_v25  ;;  %v235_v32 = vand.u32 2139095040, %v720_v26  ;;  %v414_v33 = vmul.f32 6.2831855, %v412_v27  ;;  %v232_v34 = vand.u32 2147483647, %v720_v26 }
  0xa4   :  { %385 = vst.msk [vmem:[#allocation4 + $0x8] sm:$0xff] %vm383_vm7, %v525_v28  ;;  %384 = vst.msk [vmem:[#allocation4] sm:$0xff] %vm383_vm7, %v524_v30 }
  0xa5   :  { %v138_v35 = vadd.s32 1, %v485_v31  ;;  %v236_v36 = vshrl.u32 %v235_v32, 23  ;;  %v416_v37 = vsub.f32 %v408_v18, %v414_v33 }
  0xa6   :  { %545 = shalt.err (!%p542_p4)
}
  0xa7   :  { %s625_s23 = smov 128   ;;  %s626_s24 = smov 8   ;;  %v136_v38 = vor.u32 8388608, %v135_v29  ;;  %v239_v39 = vand.u32 8388607, %v232_v34 }
  0xa8   :  { %444 = dma.vmem_to_hbm [thread:$0]  %s439_s17, 256, %s845_s6, [#allocation5], %s625_s23, %s625_s23, %s626_s24  }
  0xa9   :  { %s554_s27 = scalar_lea.vmem %s451_s19, 256  ;;  %p559_p6 = scmp.lt.s32.totalorder %s451_s19, %s451_s19 }
  0xaa   :  { %p555_p5 = scmp.ne.s32.totalorder %s451_s19, %s554_s27  ;;  %p560_p7 = scmp.lt.s32.totalorder %s554_s27, %s554_s27 }
  0xac   :  { %p561_p8 = por %p560_p7, %p559_p6 }
  0xae   :  { %p562_p9 = pnand %p561_p8, %p555_p5 }
  0xb0   :  { %565 = shalt.err (!%p562_p9)
}
  0xb1   :  { %456 = dma.vmem_to_hbm [thread:$0]  %s451_s19, 256, %s846_s7, [#allocation5], %s625_s23, %s625_s23, %s626_s24   ;;  %vm139_vm8 = vcmp.gt.s32.totalorder %v138_v35, 0  ;;  %v489_v40 = vadd.s32 4294967169, %v236_v36  ;;  %419 = vst.msk [vmem:[#allocation7] sm:$0x1] %vm418_vm6, %v416_v37 }
  0xb2   :  { %v140_v41 = vsel %vm139_vm8, %v138_v35, 0  ;;  %v240_v42 = vor.u32 8388608, %v239_v39  ;;  %s574_s6 = scalar_lea.vmem %s731_s21, 32  ;;  %p579_p11 = scmp.lt.s32.totalorder %s731_s21, %s731_s21 }
  0xb3   :  { %p575_p10 = scmp.ne.s32.totalorder %s731_s21, %s574_s6  ;;  %p580_p12 = scmp.lt.s32.totalorder %s574_s6, %s574_s6 }
  0xb5   :  { %p581_p13 = por %p580_p12, %p579_p11 }
  0xb7   :  { %p582_p0 = pnand %p581_p13, %p575_p10 }
  0xb9   :  { %585 = shalt.err (!%p582_p0)
}
  0xba   :  { %s627_s30 = smov 16   ;;  %s628_s0 = smov 1   ;;  %v142_v43 = vand.u32 31, %v140_v41  ;;  %v242_v44 = vadd.s32 1, %v489_v40  ;;  %v759_v45 = vshll.u32 %v136_v38, 8  ;;  %v141_v46 = vshrl.u32 %v140_v41, 5 }
  0xbb   :  { %468 = dma.vmem_to_hbm [thread:$0]  %s731_s21, 32, %s847_s8, [#allocation8], %s627_s30, %s627_s30, %s628_s0   ;;  %v761_v48 = vshll.u32 %v240_v42, 8  ;;  %v629_v50 = vmov 683565275   ;;  %vm130_vm7 = vcmp.lt.s32.totalorder %v709_v16, 0 }
  0xbc   :  { %v143_v47 = vsub.s32 32, %v142_v43  ;;  %vm243_vm9 = vcmp.gt.s32.totalorder %v242_v44, 0  ;;  %v145_v51 = vshll.u32 %v629_v50, %v142_v43  ;;  %v630_v52 = vmov 2475754826   ;;  %s635_s7 = smov [#allocation2]  }
  0xbd   :  { %v244_v49 = vsel %vm243_vm9, %v242_v44, 0  ;;  %v148_v53 = vshll.u32 %v630_v52, %v142_v43  ;;  %v631_v54 = vmov 2131351028   ;;  %v632_v58 = vmov 2102212464   ;;  %s426_s8 = sshll.u32 %s635_s7, 4  ;;  %s427_s8 = int_to_ptr.vmem [resolvable:$true] %s426_s8 }
  0xbe   :  { %v151_v55 = vshll.u32 %v631_v54, %v142_v43  ;;  %v246_v56 = vand.u32 31, %v244_v49  ;;  %v146_v57 = vshrl.u32 %v630_v52, %v143_v47  ;;  %v154_v60 = vshll.u32 %v632_v58, %v142_v43  ;;  %s594_s11 = scalar_lea.vmem %s427_s8, 256  ;;  %p599_p2 = scmp.lt.s32.totalorder %s427_s8, %s427_s8 }
  0xbf   :  { %v633_v61 = vmov 920167782   ;;  %v149_v63 = vshrl.u32 %v631_v54, %v143_v47  ;;  %v152_v0 = vshrl.u32 %v632_v58, %v143_v47  ;;  %v634_v2 = vmov 1326507024   ;;  %p595_p1 = scmp.ne.s32.totalorder %s427_s8, %s594_s11  ;;  %p600_p3 = scmp.lt.s32.totalorder %s594_s11, %s594_s11 }
  0xc0   :  { %v157_v62 = vshll.u32 %v633_v61, %v142_v43  ;;  %v155_v1 = vshrl.u32 %v633_v61, %v143_v47  ;;  %v158_v3 = vshrl.u32 %v634_v2, %v143_v47  ;;  %v763_v4 = vshrl.u32 %v244_v49, 5 }
  0xc1   :  { %v247_v5 = vsub.s32 32, %v246_v56  ;;  %v144_v6 = vshrl.u32 %v629_v50, %v143_v47  ;;  %v147_v7 = vor.u32 %v146_v57, %v145_v51  ;;  %v150_v8 = vor.u32 %v149_v63, %v148_v53  ;;  %p601_p4 = por %p600_p3, %p599_p2 }
  0xc2   :  { %v153_v9 = vor.u32 %v152_v0, %v151_v55  ;;  %v156_v10 = vor.u32 %v155_v1, %v154_v60  ;;  %v159_v11 = vor.u32 %v158_v3, %v157_v62  ;;  %vm160_vm10 = vcmp.lt.s32.totalorder %v141_v46, 1 }
  0xc3   :  { %vm161_vm11 = vcmp.lt.s32.totalorder %v141_v46, 2  ;;  %vm162_vm12 = vcmp.lt.s32.totalorder %v141_v46, 3  ;;  %vm163_vm13 = vcmp.lt.s32.totalorder %v141_v46, 4  ;;  %v168_v13 = vsel %vm160_vm10, %v147_v7, %v150_v8  ;;  %p602_p5 = pnand %p601_p4, %p595_p1 }
  0xc4   :  { %v165_v12 = vsel %vm163_vm13, %v153_v9, 2102212464  ;;  %v169_v14 = vsel %vm163_vm13, %v156_v10, 920167782  ;;  %v172_v15 = vsel %vm160_vm10, %v150_v8, %v153_v9  ;;  %v164_v17 = vsel %vm160_vm10, %v144_v6, %v147_v7 }
  0xc5   :  { %v166_v18 = vsel %vm162_vm12, %v150_v8, %v165_v12  ;;  %v170_v20 = vsel %vm162_vm12, %v153_v9, %v169_v14  ;;  %v173_v21 = vsel %vm163_vm13, %v159_v11, 1326507024  ;;  %v249_v27 = vshll.u32 %v629_v50, %v246_v56 }
  0xc6   :  { %v171_v22 = vsel %vm161_vm11, %v168_v13, %v170_v20  ;;  %v174_v25 = vsel %vm162_vm12, %v156_v10, %v173_v21  ;;  %v250_v29 = vshrl.u32 %v630_v52, %v247_v5  ;;  %v248_v35 = vshrl.u32 %v629_v50, %v247_v5 }
  0xc7   :  { %v175_v31 = vsel %vm161_vm11, %v172_v15, %v174_v25  ;;  %v768_v32 = vmul.u32.u64.low %v759_v45, %v171_v22  ;;  %v769_v33 = vmul.u32.u64.high %v759_v45, %v171_v22, %v768_v32  ;;  %v167_v36 = vsel %vm161_vm11, %v164_v17, %v166_v18 }
  0xc8   :  { %v774_v37 = vmul.u32.u64.low %v759_v45, %v175_v31  ;;  %v775_v38 = vmul.u32.u64.high %v759_v45, %v175_v31, %v774_v37  ;;  %v251_v39 = vor.u32 %v250_v29, %v249_v27  ;;  %v252_v40 = vshll.u32 %v630_v52, %v246_v56 }
  0xc9   :  { %v253_v41 = vshrl.u32 %v631_v54, %v247_v5  ;;  %v255_v42 = vshll.u32 %v631_v54, %v246_v56  ;;  %v256_v43 = vshrl.u32 %v632_v58, %v247_v5  ;;  %v258_v44 = vshll.u32 %v632_v58, %v246_v56 }
  0xca   :  { %v259_v47 = vshrl.u32 %v633_v61, %v247_v5  ;;  %v261_v49 = vshll.u32 %v633_v61, %v246_v56  ;;  %v262_v51 = vshrl.u32 %v634_v2, %v247_v5  ;;  %v183_v53 = vmul.u32 %v759_v45, %v167_v36 }
  0xcb   :  { %v186_v55 = vadd.s32 1, %v769_v33  ;;  %v254_v50 = vor.u32 %v253_v41, %v252_v40  ;;  %v257_v46 = vor.u32 %v256_v43, %v255_v42  ;;  %vm185_vm14 = vc.u32 %v775_v38, %v768_v32 }
  0xcc   :  { %v260_v57 = vor.u32 %v259_v47, %v258_v44  ;;  %v263_v60 = vor.u32 %v262_v51, %v261_v49  ;;  %vm264_vm15 = vcmp.lt.s32.totalorder %v763_v4, 1  ;;  %vm265_vm0 = vcmp.lt.s32.totalorder %v763_v4, 2 }
  0xcd   :  { %v187_v52 = vsel %vm185_vm14, %v186_v55, %v769_v33  ;;  %vm266_vm1 = vcmp.lt.s32.totalorder %v763_v4, 3  ;;  %vm267_vm2 = vcmp.lt.s32.totalorder %v763_v4, 4  ;;  %v272_v56 = vsel %vm264_vm15, %v251_v39, %v254_v50 }
  0xce   :  { %v188_v45 = vadd.s32 %v187_v52, %v183_v53  ;;  %v269_v54 = vsel %vm267_vm2, %v257_v46, 2102212464  ;;  %v273_v58 = vsel %vm267_vm2, %v260_v57, 920167782  ;;  %v268_v61 = vsel %vm264_vm15, %v248_v35, %v251_v39 }
  0xcf   :  { %v274_v62 = vsel %vm266_vm1, %v257_v46, %v273_v58  ;;  %v276_v63 = vsel %vm264_vm15, %v254_v50, %v257_v46  ;;  %v277_v0 = vsel %vm267_vm2, %v263_v60, 1326507024  ;;  %v270_v2 = vsel %vm266_vm1, %v254_v50, %v269_v54 }
  0xd0   :  { %v189_v1 = vadd.s32 536870912, %v188_v45  ;;  %v275_v3 = vsel %vm265_vm0, %v272_v56, %v274_v62  ;;  %v278_v5 = vsel %vm266_vm1, %v260_v57, %v277_v0  ;;  %v271_v12 = vsel %vm265_vm0, %v268_v61, %v270_v2 }
  0xd1   :  { %v279_v6 = vsel %vm265_vm0, %v276_v63, %v278_v5  ;;  %v791_v7 = vmul.u32.u64.low %v761_v48, %v275_v3  ;;  %v792_v8 = vmul.u32.u64.high %v761_v48, %v275_v3, %v791_v7  ;;  %v287_v17 = vmul.u32 %v761_v48, %v271_v12 }
  0xd2   :  { %v190_v9 = vshrl.u32 %v189_v1, 30  ;;  %v795_v10 = vmul.u32.u64.low %v761_v48, %v279_v6  ;;  %v796_v11 = vmul.u32.u64.high %v761_v48, %v279_v6, %v795_v10  ;;  %v184_v36 = vadd.s32 %v768_v32, %v775_v38 }
  0xd3   :  { %v290_v14 = vadd.s32 1, %v792_v8  ;;  %vm129_vm8 = vcmp.le.f32.partialorder %v128_v23, 0.7853982  ;;  %vm234_vm9 = vcmp.lt.s32.totalorder %v720_v26, 0  ;;  %vm814_vm10 = vcmp.le.f32.partialorder %v232_v34, 0.7853982 }
  0xd4   :  { %v191_v13 = vshll.u32 %v190_v9, 30  ;;  %vm289_vm3 = vc.u32 %v796_v11, %v791_v7  ;;  %v288_v60 = vadd.s32 %v791_v7, %v796_v11  ;;  %vm220_vm14 = vweird.f32 %v709_v16 }
  0xd5   :  { %v291_v18 = vsel %vm289_vm3, %v290_v14, %v792_v8  ;;  %vm324_vm2 = vweird.f32 %v720_v26 }
  0xd6   :  { %v192_v15 = vsub.s32 %v188_v45, %v191_v13  ;;  %v292_v21 = vadd.s32 %v291_v18, %v287_v17  ;;  %v214_v45 = vsub.s32 4, %v190_v9 }
  0xd8   :  { %v194_v20 = vsub.s32 0, %v192_v15  ;;  %v293_v25 = vadd.s32 536870912, %v292_v21  ;;  %v215_v1 = vsel %vm130_vm7, %v214_v45, %v190_v9 }
  0xd9   :  { %v217_v6 = vsel %vm129_vm8, 0, %v215_v1 }
  0xda   :  { %v486_v22 = vmin.u32 %v194_v20, %v192_v15  ;;  %v294_v29 = vshrl.u32 %v293_v25, 30  ;;  %v221_v8 = vadd.s32 3, %v217_v6 }
  0xdc   :  { %v196_v27 = vclz %v486_v22  ;;  %v295_v33 = vshll.u32 %v294_v29, 30  ;;  %v318_v11 = vsub.s32 4, %v294_v29  ;;  %v222_v13 = vand.u32 3, %v221_v8 }
  0xde   :  { %v487_v31 = vadd.s32 4294967294, %v196_v27  ;;  %v296_v35 = vsub.s32 %v292_v21, %v295_v33  ;;  %v319_v14 = vsel %vm234_vm9, %v318_v11, %v294_v29  ;;  %vm227_vm11 = vcmp.eq.s32.totalorder %v222_v13, 2 }
  0xdf   :  { %v321_v34 = vsel %vm814_vm10, 0, %v319_v14  ;;  %vm224_vm12 = vcmp.eq.s32.totalorder %v222_v13, 0  ;;  %vm223_vm13 = vcmp.lt.s32.totalorder %v222_v13, 2 }
  0xe0   :  { %vm488_vm4 = vcmp.lt.s32.totalorder %v487_v31, 0  ;;  %v298_v39 = vsub.s32 0, %v296_v35  ;;  %v325_v27 = vadd.s32 3, %v321_v34 }
  0xe1   :  { %v199_v4 = vsel %vm488_vm4, 0, %v487_v31 }
  0xe2   :  { %v200_v37 = vsub.s32 32, %v199_v4  ;;  %v204_v48 = vsub.s32 4294967266, %v199_v4  ;;  %v201_v40 = vshll.u32 %v192_v15, %v199_v4  ;;  %v490_v43 = vmin.u32 %v298_v39, %v296_v35 }
  0xe3   :  { %v326_v29 = vand.u32 3, %v325_v27 }
  0xe4   :  { %v202_v41 = vshrl.u32 %v184_v36, %v200_v37  ;;  %v205_v42 = vadd.s32 127, %v204_v48  ;;  %v300_v49 = vclz %v490_v43 }
  0xe5   :  { %vm331_vm15 = vcmp.eq.s32.totalorder %v326_v29, 2  ;;  %vm328_vm0 = vcmp.eq.s32.totalorder %v326_v29, 0  ;;  %vm327_vm1 = vcmp.lt.s32.totalorder %v326_v29, 2 }
  0xe6   :  { %v203_v44 = vor.u32 %v202_v41, %v201_v40  ;;  %v206_v47 = vshll.u32 %v205_v42, 23  ;;  %v491_v53 = vadd.s32 4294967294, %v300_v49 }
  0xe8   :  { %v207_v51 = vor.u32 4788187, %v206_v47  ;;  %v210_v50 = vcvt.s32.f32 %v203_v44  ;;  %vm492_vm6 = vcmp.lt.s32.totalorder %v491_v53, 0 }
  0xe9   :  { %v303_v57 = vsel %vm492_vm6, 0, %v491_v53 }
  0xea   :  { %v208_v55 = vand.u32 2147483647, %v207_v51  ;;  %v304_v32 = vsub.s32 32, %v303_v57  ;;  %v308_v38 = vsub.s32 4294967266, %v303_v57  ;;  %v305_v54 = vshll.u32 %v296_v35, %v303_v57 }
  0xec   :  { %v211_v46 = vmul.f32 %v210_v50, %v208_v55  ;;  %v306_v56 = vshrl.u32 %v288_v60, %v304_v32  ;;  %v309_v58 = vadd.s32 127, %v308_v38 }
  0xee   :  { %v212_v52 = vxor.u32 2147483648, %v211_v46  ;;  %v307_v63 = vor.u32 %v306_v56, %v305_v54  ;;  %v310_v0 = vshll.u32 %v309_v58, 23 }
  0xf0   :  { %v213_v61 = vsel %vm130_vm7, %v212_v52, %v211_v46  ;;  %v311_v2 = vor.u32 4788187, %v310_v0  ;;  %v314_v5 = vcvt.s32.f32 %v307_v63 }
  0xf1   :  { %v216_v62 = vsel %vm129_vm8, %v709_v16, %v213_v61 }
  0xf2   :  { %526 = vcosq.f32 %v216_v62  ;;  %v312_v3 = vand.u32 2147483647, %v311_v2 }
  0xf3   :  { %528 = vsinq.f32 %v216_v62 }
  0xf4   :  { %v315_v7 = vmul.f32 %v314_v5, %v312_v3 }
  0xf6   :  { %v316_v10 = vxor.u32 2147483648, %v315_v7 }
  0xf8   :  { %v317_v12 = vsel %vm234_vm9, %v316_v10, %v315_v7 }
  0xf9   :  { %v320_v9 = vsel %vm814_vm10, %v720_v26, %v317_v12 }
  0xfa   :  { %530 = vcosq.f32 %v320_v9 }
  0xfb   :  { %532 = vsinq.f32 %v320_v9 }
  0xff   :  { %v527_v15 = vpop.eup %526 }
 0x100   :  { %v529_v17 = vpop.eup %528  ;;  %v228_v18 = vxor.u32 2147483648, %v527_v15 }
 0x101   :  { %v225_v20 = vxor.u32 2147483648, %v529_v17 }
 0x102   :  { %v229_v21 = vsel %vm227_vm11, %v228_v18, %v529_v17 }
 0x103   :  { %v226_v22 = vsel %vm224_vm12, %v527_v15, %v225_v20 }
 0x104   :  { %v230_v25 = vsel %vm223_vm13, %v226_v22, %v229_v21 }
 0x105   :  { %v231_v31 = vsel %vm220_vm14, nan, %v230_v25 }
 0x106   :  { %v336_v33 = vmul.f32 0.1, %v231_v31 }
 0x107   :  { %v531_v35 = vpop.eup %530 }
 0x108   :  { %v376_v4 = vmul.f32 %v524_v30, %v336_v33  ;;  %v533_v37 = vpop.eup %532  ;;  %v332_v48 = vxor.u32 2147483648, %v531_v35 }
 0x109   :  { %v329_v39 = vxor.u32 2147483648, %v533_v37 }
 0x10a   :  { %v378_v36 = vadd.f32 %v376_v4, %v711_v19  ;;  %v333_v40 = vsel %vm331_vm15, %v332_v48, %v533_v37 }
 0x10b   :  { %v330_v16 = vsel %vm328_vm0, %v531_v35, %v329_v39 }
 0x10c   :  { %381 = vst.msk [vmem:[#allocation2] sm:$0xff] %vm380_vm5, %v378_v36  ;;  %v334_v41 = vsel %vm327_vm1, %v330_v16, %v333_v40 }
 0x10d   :  { %v335_v42 = vsel %vm324_vm2, nan, %v334_v41 }
 0x10e   :  { %v337_v43 = vmul.f32 0.1, %v335_v42 }
 0x110   :  { %v377_v19 = vmul.f32 %v525_v28, %v337_v43 }
 0x112   :  { %v379_v30 = vadd.f32 %v377_v19, %v702_v59 }
 0x114   :  { %382 = vst.msk [vmem:[#allocation2 + $0x8] sm:$0xff] %vm380_vm5, %v379_v30 }
 0x115   :  { %605 = shalt.err (!%p602_p5)
}
 0x116   :  { %432 = dma.vmem_to_hbm [thread:$0]  %s427_s8, 256, %s844_s5, [#allocation3], %s625_s23, %s625_s23, %s626_s24  }
 0x117   :  { %614 = dma.done.wait [#allocation3], 256  }
 0x118   :  { %615 = vsyncadd [#allocation3], 4294967040 }
 0x119   :  { %616 = dma.done.wait [#allocation5], 512  }
 0x11a   :  { %617 = vsyncadd [#allocation5], 4294966784 }
 0x11b   :  { %618 = dma.done.wait [#allocation8], 32  }
 0x11c   :  { %619 = vsyncadd [#allocation8], 4294967264 }
 0x11d   :  { %481 = vsyncpa [#allocation3], 1 }
 0x11e   :  { %482 = vsyncpa [#allocation5], 1 }
 0x11f   :  { %483 = vsyncpa [#allocation8], 1 }

</bundles_post_ra>
